<compile_context>
chip_gen: v7x
topology: tpu7x:2x2x1
jax: 0.10.0
libtpu: 0.0.40
codegen_flags: <defaults>
</compile_context>

<pallas_src>
import jax
import jax.numpy as jnp
from jax.experimental import pallas as pl
from jax.experimental.pallas import tpu as pltpu


def _round_up(x, m):
    return (x + m - 1) // m * m


def _mxu_prefers_bf16():
    """bf16 matmul inputs on v6e/v7x (bf16-native MXU + bf16 VALU); f32 elsewhere."""
    try:
        kind = jax.devices()[0].device_kind.lower()
    except Exception:
        return True
    for tag in ("v2", "v3", "v4", "v5"):
        if tag in kind:
            return False
    return True


def _choose_tile(B, F, *, block_batch, num_cores, use_bf16, vmem_budget_bytes):
    """Pick (tm, b_pad): big tiles to amortize ~0.35us/step pipeline overhead,
    bounded padding waste, >=2 blocks for dual-TC, and a VMEM cap."""
    in_bytes = 2 if use_bf16 else 4
    # Per-row VMEM: double-buffered x tile + f32 h1/h2/fc3-row temporaries.
    per_row = 2 * F * in_bytes + (128 + 64 + 128) * 4
    # Resident weights/biases (Pallas still double-buffers constant specs).
    w_bytes = 2 * ((F * 128 + 128 * 64 + 64 * 128) * in_bytes + (128 + 64) * 4)
    avail = max(vmem_budget_bytes - w_bytes, 128 * per_row)
    cap = min(block_batch, avail // per_row)
    cap = max((cap // 128) * 128, 128)

    n_blocks = pl.cdiv(B, cap)
    if B > 128 * num_cores:
        # Keep at least num_cores blocks (and a multiple of it) so the batch
        # axis can shard across both TensorCores on v7x.
        n_blocks = pl.cdiv(max(n_blocks, num_cores), num_cores) * num_cores

    if n_blocks <= 1:
        tm = _round_up(max(B, 1), 8)          # single full-extent tile
    else:
        tm = _round_up(pl.cdiv(B, n_blocks), 128)   # lane-dense output blocks
    b_pad = _round_up(B, tm)
    return tm, b_pad


def _make_kernel(compute_dtype):
    def mlp_kernel(x_ref, w1_ref, b1_ref, w2_ref, b2_ref, w3_ref, b3_ref, o_ref):
        x = x_ref[...].astype(compute_dtype)                          # (TM, F)

        # fc1 + ReLU (MXU, f32 accumulate)
        h1 = jnp.dot(x, w1_ref[...], preferred_element_type=jnp.float32)
        h1 = jnp.maximum(h1 + b1_ref[...], 0.0)                       # (TM, 128) f32

        # fc2 + ReLU (MXU, f32 accumulate)
        h2 = jnp.dot(h1.astype(compute_dtype), w2_ref[...],
                     preferred_element_type=jnp.float32)
        h2 = jnp.maximum(h2 + b2_ref[...], 0.0)                       # (TM, 64) f32

        # fc3 on the MXU against the zero-padded (64, 128) w3 (only column 0
        # is real). This keeps the big (TM, 64) activation off the XLU; only a
        # tiny (TM, 8) slice is transposed to get the lane-dense (1, TM) row.
        # (8 columns rather than 1 keeps a plain native-tiled layout; columns
        #  1..7 are the zero-padded w3 columns, discarded after the transpose.)
        l_full = jnp.dot(h2.astype(compute_dtype), w3_ref[...],
                         preferred_element_type=jnp.float32)          # (TM, 128)
        logits = l_full[:, :8].T[0:1, :] + b3_ref[0, 0]               # (1, TM)

        # sigmoid: exp on the EUP; approx reciprocal also goes to the EUP slot.
        o_ref[...] = pl.reciprocal(1.0 + jnp.exp(-logits), approx=True)

    return mlp_kernel


def binary_classifier_forward(x, params, *, block_batch=4096, use_bf16=None,
                              num_cores=2, vmem_budget_bytes=12 << 20):
    """x: (B, F) float32.

    params: dict with w1 (F,128), b1 (1,128), w2 (128,64), b2 (1,64),
    w3 (64,1), b3 (1,1), all float32.
    Returns sigmoid(fc3(relu(fc2(relu(fc1(x)))))) of shape (B, 1).
    """
    if use_bf16 is None:
        use_bf16 = _mxu_prefers_bf16()
    compute_dtype = jnp.bfloat16 if use_bf16 else jnp.float32

    w1, b1 = params["w1"], params["b1"]
    w2, b2 = params["w2"], params["b2"]
    w3, b3 = params["w3"], params["b3"]
    B, F = x.shape

    # Zero-pad w3 (64,1) -> (64,128) once (tiny) so fc3 runs on the MXU.
    w3p = jnp.pad(w3, ((0, 0), (0, 128 - w3.shape[1])))
    if use_bf16:
        w1 = w1.astype(jnp.bfloat16)
        w2 = w2.astype(jnp.bfloat16)
        w3p = w3p.astype(jnp.bfloat16)

    tm, b_pad = _choose_tile(B, F, block_batch=block_batch, num_cores=num_cores,
                             use_bf16=use_bf16, vmem_budget_bytes=vmem_budget_bytes)
    if b_pad != B:
        x = jnp.pad(x, ((0, b_pad - B), (0, 0)))
    grid = (b_pad // tm,)

    # Constant index_map -> operand fetched once and kept resident in VMEM.
    def resident(a):
        return pl.BlockSpec(a.shape, lambda i: (0,) * a.ndim)

    out_row = pl.pallas_call(
        _make_kernel(compute_dtype),
        out_shape=jax.ShapeDtypeStruct((1, b_pad), jnp.float32),
        grid=grid,
        in_specs=[
            pl.BlockSpec((tm, F), lambda i: (i, 0)),                 # x: tiled over batch
            resident(w1), resident(b1),
            resident(w2), resident(b2),
            resident(w3p),
            pl.BlockSpec(memory_space=pltpu.MemorySpace.SMEM),       # b3 scalar
        ],
        out_specs=pl.BlockSpec((1, tm), lambda i: (0, i)),           # lane-dense output
        compiler_params=pltpu.CompilerParams(
            dimension_semantics=("parallel",),                       # dual-TC on v7x
        ),
    )(x, w1, b1, w2, b2, w3p, b3)

    return out_row[0, :B].reshape(B, 1)


def init_params(key, input_size):
    """Deterministic init mimicking PyTorch nn.Linear default (uniform +/- 1/sqrt(fan_in))."""
    def linear(k, fan_in, fan_out):
        kw, kb = jax.random.split(k)
        bound = 1.0 / jnp.sqrt(fan_in)
        w = jax.random.uniform(kw, (fan_in, fan_out), jnp.float32, -bound, bound)
        b = jax.random.uniform(kb, (1, fan_out), jnp.float32, -bound, bound)
        return w, b

    k1, k2, k3 = jax.random.split(key, 3)
    w1, b1 = linear(k1, input_size, 128)
    w2, b2 = linear(k2, 128, 64)
    w3, b3 = linear(k3, 64, 1)        # w3: (64, 1) column, b3: (1, 1) scalar
    return {"w1": w1, "b1": b1, "w2": w2, "b2": b2, "w3": w3, "b3": b3}


def reference_forward(x, p):
    h1 = jnp.maximum(x @ p["w1"] + p["b1"], 0.0)
    h2 = jnp.maximum(h1 @ p["w2"] + p["b2"], 0.0)
    return jax.nn.sigmoid(h2 @ p["w3"] + p["b3"])


if __name__ == "__main__":
    key = jax.random.PRNGKey(0)
    k_x, k_p, k_x2 = jax.random.split(key, 3)

    batch = 8
    input_size = 32  # stand-in for features.shape[1]
    x = jax.random.normal(k_x, (batch, input_size), jnp.float32)
    params = init_params(k_p, input_size)
    ref_small = reference_forward(x, params)

    # 1) Small batch, pure f32 path (single full-extent tile), tight tolerance
    #    (approx reciprocal in the sigmoid is the only deviation).
    out_f32 = jax.block_until_ready(
        binary_classifier_forward(x, params, use_bf16=False))
    assert out_f32.shape == (batch, 1)
    assert jnp.allclose(out_f32, ref_small, atol=5e-3, rtol=5e-3), \
        "mismatch vs JAX reference (small batch, f32)"

    # 2) Multi-tile / padded batch (grid > 1, 128-multiple tiles), pure f32.
    big_batch = 600
    x2 = jax.random.normal(k_x2, (big_batch, input_size), jnp.float32)
    ref_big = reference_forward(x2, params)
    out2_f32 = jax.block_until_ready(
        binary_classifier_forward(x2, params, use_bf16=False))
    assert out2_f32.shape == (big_batch, 1)
    assert jnp.allclose(out2_f32, ref_big, atol=5e-3, rtol=5e-3), \
        "mismatch vs JAX reference (tiled batch, f32)"

    # 3) Same batch with the default (auto) path: bf16 matmul inputs on
    #    v6e/v7x, f32 elsewhere. Looser tolerance for the bf16 MXU path.
    out2_auto = jax.block_until_ready(binary_classifier_forward(x2, params))
    assert out2_auto.shape == (big_batch, 1)
    assert jnp.allclose(out2_auto, ref_big, atol=2e-2, rtol=2e-2), \
        "mismatch vs JAX reference (tiled batch, auto/bf16)"

    print("KERNEL_OK")
</pallas_src>

<mosaic_0001>
module attributes {stable_mosaic.version = 11 : i64} {
  func.func @mlp_kernel(%arg0: i32, %arg1: memref<8x32xf32, #tpu.memory_space<vmem>>, %arg2: memref<32x128xf32, #tpu.memory_space<vmem>>, %arg3: memref<1x128xf32, #tpu.memory_space<vmem>>, %arg4: memref<128x64xf32, #tpu.memory_space<vmem>>, %arg5: memref<1x64xf32, #tpu.memory_space<vmem>>, %arg6: memref<64x128xf32, #tpu.memory_space<vmem>>, %arg7: memref<1x1xf32, #tpu.memory_space<smem>>, %arg8: memref<1x8xf32, #tpu.memory_space<vmem>>) attributes {dimension_semantics = [#tpu.dimension_semantics<parallel>], iteration_bounds = array<i64: 1>, scalar_prefetch = 0 : i64, scratch_operands = 0 : i64, tpu.core_type = #tpu.core_type<tc>, window_params = [{transform_indices = @transform_0, window_bounds = array<i64: 8, 32>}, {pipeline_mode = #tpu.pipeline_mode<synchronous>, transform_indices = @transform_1, window_bounds = array<i64: 32, 128>}, {pipeline_mode = #tpu.pipeline_mode<synchronous>, transform_indices = @transform_2, window_bounds = array<i64: 1, 128>}, {pipeline_mode = #tpu.pipeline_mode<synchronous>, transform_indices = @transform_3, window_bounds = array<i64: 128, 64>}, {pipeline_mode = #tpu.pipeline_mode<synchronous>, transform_indices = @transform_4, window_bounds = array<i64: 1, 64>}, {pipeline_mode = #tpu.pipeline_mode<synchronous>, transform_indices = @transform_5, window_bounds = array<i64: 64, 128>}, {transform_indices = @transform_6, window_bounds = array<i64: 1, 1>}, {transform_indices = @transform_7, window_bounds = array<i64: 1, 8>}]} {
    %c0 = arith.constant 0 : index
    %c0_0 = arith.constant 0 : index
    %0 = vector.load %arg1[%c0, %c0_0] : memref<8x32xf32, #tpu.memory_space<vmem>>, vector<8x32xf32>
    %c0_1 = arith.constant 0 : index
    %c0_2 = arith.constant 0 : index
    %1 = vector.load %arg2[%c0_1, %c0_2] : memref<32x128xf32, #tpu.memory_space<vmem>>, vector<32x128xf32>
    %cst = arith.constant dense<0.000000e+00> : vector<8x128xf32>
    %2 = tpu.matmul %0, %1, %cst {dimension_numbers = #tpu.dot_dimension_numbers<[1], [0], [0], [1], [0, 0, 1, 1], [], []>} : vector<8x32xf32>, vector<32x128xf32>, vector<8x128xf32> -> vector<8x128xf32>
    %c0_3 = arith.constant 0 : index
    %c0_4 = arith.constant 0 : index
    %3 = vector.load %arg3[%c0_3, %c0_4] : memref<1x128xf32, #tpu.memory_space<vmem>>, vector<1x128xf32>
    %4 = vector.broadcast %3 : vector<1x128xf32> to vector<8x128xf32>
    %5 = arith.addf %2, %4 : vector<8x128xf32>
    %cst_5 = arith.constant 0.000000e+00 : f32
    %6 = vector.broadcast %cst_5 : f32 to vector<8x128xf32>
    %7 = arith.maximumf %5, %6 : vector<8x128xf32>
    %c0_6 = arith.constant 0 : index
    %c0_7 = arith.constant 0 : index
    %8 = vector.load %arg4[%c0_6, %c0_7] : memref<128x64xf32, #tpu.memory_space<vmem>>, vector<128x64xf32>
    %cst_8 = arith.constant dense<0.000000e+00> : vector<8x64xf32>
    %9 = tpu.matmul %7, %8, %cst_8 {dimension_numbers = #tpu.dot_dimension_numbers<[1], [0], [0], [1], [0, 0, 1, 1], [], []>} : vector<8x128xf32>, vector<128x64xf32>, vector<8x64xf32> -> vector<8x64xf32>
    %c0_9 = arith.constant 0 : index
    %c0_10 = arith.constant 0 : index
    %10 = vector.load %arg5[%c0_9, %c0_10] : memref<1x64xf32, #tpu.memory_space<vmem>>, vector<1x64xf32>
    %11 = vector.broadcast %10 : vector<1x64xf32> to vector<8x64xf32>
    %12 = arith.addf %9, %11 : vector<8x64xf32>
    %cst_11 = arith.constant 0.000000e+00 : f32
    %13 = vector.broadcast %cst_11 : f32 to vector<8x64xf32>
    %14 = arith.maximumf %12, %13 : vector<8x64xf32>
    %c0_12 = arith.constant 0 : index
    %c0_13 = arith.constant 0 : index
    %15 = vector.load %arg6[%c0_12, %c0_13] : memref<64x128xf32, #tpu.memory_space<vmem>>, vector<64x128xf32>
    %cst_14 = arith.constant dense<0.000000e+00> : vector<8x128xf32>
    %16 = tpu.matmul %14, %15, %cst_14 {dimension_numbers = #tpu.dot_dimension_numbers<[1], [0], [0], [1], [0, 0, 1, 1], [], []>} : vector<8x64xf32>, vector<64x128xf32>, vector<8x128xf32> -> vector<8x128xf32>
    %17 = vector.extract_strided_slice %16 {offsets = [0, 0], sizes = [8, 8], strides = [1, 1]} : vector<8x128xf32> to vector<8x8xf32>
    %18 = tpu.transpose %17, [1, 0] : vector<8x8xf32> -> vector<8x8xf32>
    %19 = vector.extract_strided_slice %18 {offsets = [0, 0], sizes = [1, 8], strides = [1, 1]} : vector<8x8xf32> to vector<1x8xf32>
    %c0_15 = arith.constant 0 : index
    %c0_16 = arith.constant 0 : index
    %20 = memref.load %arg7[%c0_15, %c0_16] : memref<1x1xf32, #tpu.memory_space<smem>>
    %21 = vector.broadcast %20 : f32 to vector<1x8xf32>
    %22 = arith.addf %19, %21 : vector<1x8xf32>
    %cst_17 = arith.constant 0.000000e+00 : f32
    %23 = vector.broadcast %cst_17 : f32 to vector<1x8xf32>
    %24 = arith.subf %23, %22 : vector<1x8xf32>
    %25 = math.exp %24 : vector<1x8xf32>
    %cst_18 = arith.constant 1.000000e+00 : f32
    %26 = vector.broadcast %cst_18 : f32 to vector<1x8xf32>
    %27 = arith.addf %26, %25 : vector<1x8xf32>
    %28 = tpu.reciprocal %27 {approx = true} : vector<1x8xf32> -> vector<1x8xf32>
    %c0_19 = arith.constant 0 : index
    %c0_20 = arith.constant 0 : index
    %29 = vector.load %arg8[%c0_19, %c0_20] : memref<1x8xf32, #tpu.memory_space<vmem>>, vector<1x8xf32>
    tpu.vector_store %arg8[%c0_19, %c0_20], %28 {strides = array<i32>} : memref<1x8xf32, #tpu.memory_space<vmem>>, vector<1x8xf32>,
    return
  }
  func.func @transform_0(%arg0: i32) -> (i32, i32) {
    %c0_i32 = arith.constant 0 : i32
    %c0_i32_0 = arith.constant 0 : i32
    return %arg0, %c0_i32 : i32, i32
  }
  func.func @transform_1(%arg0: i32) -> (i32, i32) {
    %c0_i32 = arith.constant 0 : i32
    %c0_i32_0 = arith.constant 0 : i32
    %c0_i32_1 = arith.constant 0 : i32
    return %c0_i32, %c0_i32_0 : i32, i32
  }
  func.func @transform_2(%arg0: i32) -> (i32, i32) {
    %c0_i32 = arith.constant 0 : i32
    %c0_i32_0 = arith.constant 0 : i32
    %c0_i32_1 = arith.constant 0 : i32
    return %c0_i32, %c0_i32_0 : i32, i32
  }
  func.func @transform_3(%arg0: i32) -> (i32, i32) {
    %c0_i32 = arith.constant 0 : i32
    %c0_i32_0 = arith.constant 0 : i32
    %c0_i32_1 = arith.constant 0 : i32
    return %c0_i32, %c0_i32_0 : i32, i32
  }
  func.func @transform_4(%arg0: i32) -> (i32, i32) {
    %c0_i32 = arith.constant 0 : i32
    %c0_i32_0 = arith.constant 0 : i32
    %c0_i32_1 = arith.constant 0 : i32
    return %c0_i32, %c0_i32_0 : i32, i32
  }
  func.func @transform_5(%arg0: i32) -> (i32, i32) {
    %c0_i32 = arith.constant 0 : i32
    %c0_i32_0 = arith.constant 0 : i32
    %c0_i32_1 = arith.constant 0 : i32
    return %c0_i32, %c0_i32_0 : i32, i32
  }
  func.func @transform_6(%arg0: i32) -> (i32, i32) {
    %c0_i32 = arith.constant 0 : i32
    %c0_i32_0 = arith.constant 0 : i32
    %c0_i32_1 = arith.constant 0 : i32
    return %c0_i32, %c0_i32_0 : i32, i32
  }
  func.func @transform_7(%arg0: i32) -> (i32, i32) {
    %c0_i32 = arith.constant 0 : i32
    %c0_i32_0 = arith.constant 0 : i32
    return %c0_i32, %arg0 : i32, i32
  }
}

</mosaic_0001>

<bundles_post_ra>
// kernel: tpu_custom_call.1
= control target key start
LH: loop header
LB: loop body
LE: loop exit
PB: predicated region body
PF: predicated region fallthrough
CT: control target
= control target key end

     0   :  { %v521_v3 = vmov 0.0|0.0   ;;  %vm522_vm0 = vmmov 0   ;;  %v523_v6 = vmov 0.0   ;;  %s690_s0 = inlined_call_operand.vmem [shape: f32[8,32], index: 0, kind: input, shape index: {}]   ;;  %s691_s1 = inlined_call_operand.vmem [shape: f32[32,128], index: 1, kind: input, shape index: {}]   ;;  %s692_s2 = inlined_call_operand.vmem [shape: f32[1,128], index: 2, kind: input, shape index: {}]   ;;  %s693_s3 = inlined_call_operand.vmem [shape: f32[128,64], index: 3, kind: input, shape index: {}]   ;;  %s694_s4 = inlined_call_operand.vmem [shape: f32[1,64], index: 4, kind: input, shape index: {}]   ;;  %s695_s5 = inlined_call_operand.vmem [shape: f32[64,128], index: 5, kind: input, shape index: {}]   ;;  %s696_s6 = inlined_call_operand.<no memory space> [shape: f32[1,1], index: 6, kind: input, shape index: {}]   ;;  %s697_s7 = inlined_call_operand.hbm [shape: f32[1,8], index: 7, kind: output, shape index: {}]  }
   0x1   :  { %v29_v0 = vld [vmem:[%s691_s1] sm:$0xff]  ;;  %v30_v1 = vld [vmem:[%s691_s1 + $0x8] sm:$0xff]  ;;  %v31_v2 = vld [vmem:[%s691_s1 + $0x10] sm:$0xff]  ;;  %447 = vmatprep.subr.bf16.mxu0 %v521_v3  ;;  %390 = vmatprep.mubr.msk.f32.mxu0 %vm522_vm0, %v523_v6 }
   0x2   :  { %v448_v4 = vpack.c.bf16 %v30_v1, %v29_v0  ;;  %v32_v5 = vld [vmem:[%s691_s1 + $0x18] sm:$0xff]  ;;  %v115_v7 = vld [vmem:[%s693_s3] sm:$0xff]  ;;  %453 = vmatprep.subr.bf16.mxu1 %v521_v3  ;;  %v116_v8 = vld [vmem:[%s693_s3 + $0x8] sm:$0xff]  ;;  %425 = vmatprep.mubr.msk.f32.mxu1 %vm522_vm0, %v523_v6 }
   0x3   :  { %v117_v9 = vld [vmem:[%s693_s3 + $0x10] sm:$0xff]  ;;  %v118_v10 = vld [vmem:[%s693_s3 + $0x18] sm:$0xff]  ;;  %v451_v11 = vpack.c.bf16 %v32_v5, %v31_v2  ;;  %v454_v12 = vpack.c.bf16 %v116_v8, %v115_v7  ;;  %v119_v14 = vld [vmem:[%s693_s3 + $0x20] sm:$0xff] }
   0x4   :  { %449 = vmatpush3.bf16.msra.mxu0 %v448_v4  ;;  %v457_v13 = vpack.c.bf16 %v118_v10, %v117_v9  ;;  %v120_v15 = vld [vmem:[%s693_s3 + $0x28] sm:$0xff] }
   0x5   :  { %450 = vmatprep.subr.bf16.mxu0 %v521_v3  ;;  %455 = vmatpush3.bf16.msra.mxu1 %v454_v12 }
   0x6   :  { %456 = vmatprep.subr.bf16.mxu1 %v521_v3 }
   0x7   :  { %13 = vsyncpa [#allocation4], 0  ;;  %v28_v16 = vld [vmem:[%s690_s0] sm:$0xff]  ;;  %vm40_vm1 = vcmask 261120   ;;  %v460_v17 = vpack.c.bf16 %v120_v15, %v119_v14  ;;  %v121_v18 = vld [vmem:[%s693_s3 + $0x30] sm:$0xff]  ;;  %vm217_vm2 = vcmask 523264   ;;  %v324_v57 = vstv %s696_s6 }
   0x8   :  { %452 = vmatpush3.bf16.msra.mxu0 %v451_v11  ;;  %v122_v19 = vld [vmem:[%s693_s3 + $0x38] sm:$0xff]  ;;  %v123_v21 = vld [vmem:[%s693_s3 + $0x40] sm:$0xff]  ;;  %v124_v22 = vld [vmem:[%s693_s3 + $0x48] sm:$0xff]  ;;  %vm331_vm3 = vcmask 57344  }
   0x9   :  { %477 = vmatprep.subr.bf16.mxu0 %v521_v3  ;;  %458 = vmatpush3.bf16.msra.mxu1 %v457_v13  ;;  %v463_v20 = vpack.c.bf16 %v122_v19, %v121_v18  ;;  %v466_v23 = vpack.c.bf16 %v124_v22, %v123_v21  ;;  %v125_v24 = vld [vmem:[%s693_s3 + $0x50] sm:$0xff]  ;;  %v126_v25 = vld [vmem:[%s693_s3 + $0x58] sm:$0xff]  ;;  %v127_v27 = vld [vmem:[%s693_s3 + $0x60] sm:$0xff] }
   0xa   :  { %459 = vmatprep.subr.bf16.mxu1 %v521_v3  ;;  %v469_v26 = vpack.c.bf16 %v126_v25, %v125_v24  ;;  %v128_v28 = vld [vmem:[%s693_s3 + $0x68] sm:$0xff]  ;;  %v129_v30 = vld [vmem:[%s693_s3 + $0x70] sm:$0xff]  ;;  %v130_v31 = vld [vmem:[%s693_s3 + $0x78] sm:$0xff] }
   0xb   :  { %391 = vmatmul.mubr.msk.f32.vlgmr.msra.gmra.mrb[0].mxu0 %vm40_vm1, %v28_v16  ;;  %v472_v29 = vpack.c.bf16 %v128_v28, %v127_v27  ;;  %v475_v32 = vpack.c.bf16 %v130_v31, %v129_v30  ;;  %v209_v33 = vld [vmem:[%s695_s5] sm:$0xff]  ;;  %v210_v34 = vld [vmem:[%s695_s5 + $0x8] sm:$0xff]  ;;  %v211_v35 = vld [vmem:[%s695_s5 + $0x10] sm:$0xff] }
   0xc   :  { %444 = vmatprep.mubr.msk.f32.mxu0 %vm522_vm0, %v523_v6  ;;  %v478_v36 = vpack.c.bf16 %v210_v34, %v209_v33  ;;  %v212_v37 = vld [vmem:[%s695_s5 + $0x18] sm:$0xff]  ;;  %v213_v39 = vld [vmem:[%s695_s5 + $0x20] sm:$0xff]  ;;  %v214_v40 = vld [vmem:[%s695_s5 + $0x28] sm:$0xff] }
   0xd   :  { %461 = vmatpush3.bf16.msra.mxu1 %v460_v17  ;;  %v481_v38 = vpack.c.bf16 %v212_v37, %v211_v35  ;;  %v484_v41 = vpack.c.bf16 %v214_v40, %v213_v39  ;;  %v347_v42 = vld [vmem:[%s692_s2] ss:$0 sm:$0xff]  ;;  %v215_v47 = vld [vmem:[%s695_s5 + $0x30] sm:$0xff]  ;;  %v216_v48 = vld [vmem:[%s695_s5 + $0x38] sm:$0xff] }
   0xe   :  { %462 = vmatprep.subr.bf16.mxu1 %v521_v3  ;;  %479 = vmatpush3.bf16.msra.mxu0 %v478_v36  ;;  %v487_v49 = vpack.c.bf16 %v216_v48, %v215_v47  ;;  %v349_v50 = vld [vmem:[%s694_s4] ss:$0 sm:$0xff]  ;;  %s524_s4 = smov [#allocation3]  }
   0xf   :  { %480 = vmatprep.subr.bf16.mxu0 %v521_v3  ;;  %s339_s5 = sshll.u32 %s524_s4, 4  ;;  %s340_s5 = int_to_ptr.vmem [resolvable:$true] %s339_s5 }
  0x10   :  { %s497_s13 = scalar_lea.vmem %s340_s5, 16  ;;  %s501_s14 = scalar_lea.vmem %s340_s5, 32 }
  0x11   :  { %464 = vmatpush3.bf16.msra.mxu1 %v463_v20  ;;  %p498_p0 = scmp.ne.s32.totalorder %s340_s5, %s497_s13  ;;  %p502_p1 = scmp.lt.s32.totalorder %s340_s5, %s340_s5 }
  0x12   :  { %465 = vmatprep.subr.bf16.mxu1 %v521_v3  ;;  %482 = vmatpush3.bf16.msra.mxu0 %v481_v38  ;;  %p503_p2 = scmp.lt.s32.totalorder %s501_s14, %s497_s13 }
  0x13   :  { %483 = vmatprep.subr.bf16.mxu0 %v521_v3 }
  0x14   :  { %p504_p3 = por %p503_p2, %p502_p1 }
  0x15   :  { %467 = vmatpush3.bf16.msra.mxu1 %v466_v23 }
  0x16   :  { %468 = vmatprep.subr.bf16.mxu1 %v521_v3  ;;  %485 = vmatpush3.bf16.msra.mxu0 %v484_v41  ;;  %p505_p4 = pnand %p504_p3, %p498_p0 }
  0x17   :  { %486 = vmatprep.subr.bf16.mxu0 %v521_v3 }
  0x19   :  { %470 = vmatpush3.bf16.msra.mxu1 %v469_v26 }
  0x1a   :  { %471 = vmatprep.subr.bf16.mxu1 %v521_v3  ;;  %488 = vmatpush3.bf16.msra.mxu0 %v487_v49 }
  0x1d   :  { %473 = vmatpush3.bf16.msra.mxu1 %v472_v29 }
  0x1e   :  { %474 = vmatprep.subr.bf16.mxu1 %v521_v3 }
  0x21   :  { %476 = vmatpush3.bf16.msra.mxu1 %v475_v32 }
  0xde   :  { %v110_v43 = vpop.f32.mrb[0].mxu0 }
  0xdf   :  { %v111_v44 = vadd.f32 %v347_v42, %v110_v43  ;;  %v392_v45 = vpop.f32.mrb[1].mxu0 }
  0xe1   :  { %v114_v46 = vmax.f32 %v111_v44, 0.0 }
  0xe3   :  { %426 = vmatmul.mubr.f32.vlgmr.msra.gmra.mrb[0].mxu1 %v114_v46 }
 0x1b6   :  { %v204_v51 = vpop.f32.mrb[0].mxu1 }
 0x1b7   :  { %v205_v52 = vadd.f32 %v349_v50, %v204_v51  ;;  %v427_v53 = vpop.f32.mrb[1].mxu1 }
 0x1b9   :  { %v208_v54 = vmax.f32 %v205_v52, 0.0 }
 0x1bb   :  { %445 = vmatmul.mubr.msk.f32.vlgmr.msra.gmra.mrb[2].mxu0 %vm217_vm2, %v208_v54 }
 0x28e   :  { %v287_v55 = vpop.f32.mrb[2].mxu0 }
 0x28f   :  { %291 = vxpose.xlu0.b32.start.end [1/1] (short) (narrow) %v287_v55, 8  ;;  %v446_v56 = vpop.f32.mrb[3].mxu0 }
 0x30f   :  { %v307_v58 = vpop.trf.xlu0 }
 0x310   :  { %v325_v59 = vadd.f32 %v324_v57, %v307_v58 }
 0x312   :  { %v326_v60 = vsub.f32 0.0, %v325_v59 }
 0x314   :  { %v327_v61 = vmul.f32 1.442695, %v326_v60 }
 0x316   :  { %493 = vpow2.f32 %v327_v61 }
 0x320   :  { %v494_v62 = vpop.eup %493 }
 0x321   :  { %v329_v63 = vadd.f32 1.0, %v494_v62 }
 0x323   :  { %495 = vrcp.f32 %v329_v63 }
 0x32d   :  { %v496_v0 = vpop.eup %495 }
 0x32e   :  { %332 = vst.msk [vmem:[#allocation3] sm:$0x1] %vm331_vm3, %v496_v0 }
 0x32f   :  { %508 = shalt.err (!%p505_p4)
}
 0x330   :  { %s509_s1 = scalar_lea.hbm %s697_s7, 16 }
 0x331   :  { %p510_p5 = scmp.ne.s32.totalorder %s697_s7, %s509_s1  ;;  %p513_p6 = scmp.lt.u32.totalorder %s509_s1, %s697_s7 }
 0x333   :  { %p515_p7 = pnand %p513_p6, %p510_p5 }
 0x335   :  { %518 = shalt.err (!%p515_p7)
}
 0x336   :  { %342 = dma.vmem_to_hbm [thread:$0]  %s340_s5, 16, %s697_s7, [#allocation4]  }
 0x337   :  { %519 = dma.done.wait [#allocation4], 16  }
 0x338   :  { %520 = vsyncadd [#allocation4], 4294967280 }
 0x339   :  { %346 = vsyncpa [#allocation4], 1 }

</bundles_post_ra>
